<compile_context>
chip_gen: v5e
topology: v5e:2x2
jax: 0.10.0
libtpu: 0.0.40
codegen_flags: <defaults>
</compile_context>

<pallas_src>
import jax
import jax.numpy as jnp
from jax.experimental import pallas as pl
from jax.experimental.pallas import tpu as pltpu

IN_FEATURES = 128
OUT_FEATURES = 128

_SINGLE_CALL_MAX = 1024   # up to this many rows: one VMEM-resident call, no grid
_BATCH_TILE = 1024        # rows per grid step on the batched path (>= 2 steps there)


def hardsigmoid_linear_kernel(x_ref, w_ref, b_ref, o_ref):
    # w' = W^T / 6 ; b' = (b + 3) / 6  =>  out = clip(x @ w' + b', 0, 1)
    y = jnp.dot(x_ref[...], w_ref[...], preferred_element_type=jnp.float32)
    y = y + b_ref[...]
    o_ref[...] = jnp.clip(y, 0.0, 1.0).astype(o_ref.dtype)


def _cost_estimate(batch, in_f, out_f):
    return pl.CostEstimate(
        flops=2 * batch * in_f * out_f,
        transcendentals=0,
        bytes_accessed=4 * (batch * in_f + in_f * out_f + out_f + batch * out_f),
    )


def model_forward(x, w_scaled_t, b_scaled):
    """x: (B, 128) f32, w_scaled_t: (128, 128) f32 (= W.T/6), b_scaled: (1, 128) f32 (= (b+3)/6)."""
    B, in_f = x.shape
    out_f = w_scaled_t.shape[1]

    if B <= _SINGLE_CALL_MAX:
        # Latency path: no grid, everything lives in VMEM for one invocation.
        # (For serving with many distinct small B's, bucket B to the next
        #  multiple of 8 outside this function to avoid recompile churn.)
        return pl.pallas_call(
            hardsigmoid_linear_kernel,
            out_shape=jax.ShapeDtypeStruct((B, out_f), jnp.float32),
            in_specs=[
                pl.BlockSpec(memory_space=pltpu.MemorySpace.VMEM),
                pl.BlockSpec(memory_space=pltpu.MemorySpace.VMEM),
                pl.BlockSpec(memory_space=pltpu.MemorySpace.VMEM),
            ],
            out_specs=pl.BlockSpec(memory_space=pltpu.MemorySpace.VMEM),
            cost_estimate=_cost_estimate(B, in_f, out_f),
        )(x, w_scaled_t, b_scaled)

    # Throughput path: tile the batch dim (>= 2 grid steps since B > tile),
    # mark it "parallel" so v7x's two TensorCores split the rows; weights and
    # bias stay resident across steps.  The ragged last block is handled by
    # Pallas: out-of-bounds output rows are never written, and the garbage
    # padding rows of x only feed those masked rows (K is not tiled), so no
    # explicit padding or output slicing is needed.
    num_steps = pl.cdiv(B, _BATCH_TILE)
    # Double-buffered VMEM footprint: 2*(512 KiB in + 512 KiB out) + 64 KiB
    # weight ≈ 2.1 MiB — comfortably within scoped VMEM on v5e/v6e/v7x.
    return pl.pallas_call(
        hardsigmoid_linear_kernel,
        out_shape=jax.ShapeDtypeStruct((B, out_f), jnp.float32),
        grid=(num_steps,),
        in_specs=[
            pl.BlockSpec((_BATCH_TILE, in_f), lambda i: (i, 0)),
            pl.BlockSpec((in_f, out_f), lambda i: (0, 0)),
            pl.BlockSpec((1, out_f), lambda i: (0, 0)),
        ],
        out_specs=pl.BlockSpec((_BATCH_TILE, out_f), lambda i: (i, 0)),
        compiler_params=pltpu.CompilerParams(dimension_semantics=("parallel",)),
        cost_estimate=_cost_estimate(B, in_f, out_f),
    )(x, w_scaled_t, b_scaled)


if __name__ == "__main__":
    key = jax.random.PRNGKey(0)
    k_x, k_w, k_b, k_x2 = jax.random.split(key, 4)

    # Deterministic parameter init (uniform like torch Linear's default range).
    bound = 1.0 / jnp.sqrt(IN_FEATURES)
    w = jax.random.uniform(k_w, (OUT_FEATURES, IN_FEATURES), jnp.float32, -bound, bound)
    b = jax.random.uniform(k_b, (1, OUT_FEATURES), jnp.float32, -bound, bound)

    # One-time fold of the hardsigmoid affine constants into the parameters:
    #   hardsigmoid(x @ W^T + b) == clip(x @ (W^T / 6) + (b + 3) / 6, 0, 1)
    w_scaled_t = w.T / 6.0
    b_scaled = (b + 3.0) / 6.0

    # TODO(synk): self.linear2 in the PyTorch module is unused in forward(); omitted.

    def reference(x):
        return jnp.clip(x @ w.T + b + 3.0, 0.0, 6.0) / 6.0

    # 1) Spec-sized input: x1 = torch.randn(1, 128) -> latency path.
    x1 = jax.random.normal(k_x, (1, IN_FEATURES), jnp.float32)
    out1 = jax.block_until_ready(model_forward(x1, w_scaled_t, b_scaled))
    assert out1.shape == (1, OUT_FEATURES)
    assert jnp.allclose(out1, reference(x1), atol=1e-5, rtol=1e-5)

    # 2) Larger batch with a ragged tail -> batched path (3 grid steps, no pad).
    x2 = jax.random.normal(k_x2, (2500, IN_FEATURES), jnp.float32)
    out2 = jax.block_until_ready(model_forward(x2, w_scaled_t, b_scaled))
    assert out2.shape == (2500, OUT_FEATURES)
    assert jnp.allclose(out2, reference(x2), atol=1e-5, rtol=1e-5)

    print("KERNEL_OK")
</pallas_src>

<mosaic_0001>
module attributes {stable_mosaic.version = 11 : i64} {
  func.func @hardsigmoid_linear_kernel(%arg0: memref<1x128xf32, #tpu.memory_space<vmem>>, %arg1: memref<128x128xf32, #tpu.memory_space<vmem>>, %arg2: memref<1x128xf32, #tpu.memory_space<vmem>>, %arg3: memref<1x128xf32, #tpu.memory_space<vmem>>) attributes {dimension_semantics = [], scalar_prefetch = 0 : i64, scratch_operands = 0 : i64, tpu.core_type = #tpu.core_type<tc>} {
    %c0 = arith.constant 0 : index
    %c0_0 = arith.constant 0 : index
    %0 = vector.load %arg0[%c0, %c0_0] : memref<1x128xf32, #tpu.memory_space<vmem>>, vector<1x128xf32>
    %c0_1 = arith.constant 0 : index
    %c0_2 = arith.constant 0 : index
    %1 = vector.load %arg1[%c0_1, %c0_2] : memref<128x128xf32, #tpu.memory_space<vmem>>, vector<128x128xf32>
    %cst = arith.constant dense<0.000000e+00> : vector<1x128xf32>
    %2 = tpu.matmul %0, %1, %cst {dimension_numbers = #tpu.dot_dimension_numbers<[1], [0], [0], [1], [0, 0, 1, 1], [], []>} : vector<1x128xf32>, vector<128x128xf32>, vector<1x128xf32> -> vector<1x128xf32>
    %c0_3 = arith.constant 0 : index
    %c0_4 = arith.constant 0 : index
    %3 = vector.load %arg2[%c0_3, %c0_4] : memref<1x128xf32, #tpu.memory_space<vmem>>, vector<1x128xf32>
    %4 = arith.addf %2, %3 : vector<1x128xf32>
    %cst_5 = arith.constant 0.000000e+00 : f32
    %cst_6 = arith.constant 1.000000e+00 : f32
    %5 = vector.broadcast %cst_5 : f32 to vector<1x128xf32>
    %6 = arith.maximumf %5, %4 : vector<1x128xf32>
    %7 = vector.broadcast %cst_6 : f32 to vector<1x128xf32>
    %8 = arith.minimumf %7, %6 : vector<1x128xf32>
    %c0_7 = arith.constant 0 : index
    %c0_8 = arith.constant 0 : index
    %9 = vector.load %arg3[%c0_7, %c0_8] : memref<1x128xf32, #tpu.memory_space<vmem>>, vector<1x128xf32>
    tpu.vector_store %arg3[%c0_7, %c0_8], %8 {strides = array<i32>} : memref<1x128xf32, #tpu.memory_space<vmem>>, vector<1x128xf32>,
    return
  }
}

</mosaic_0001>

<bundles_post_ra>
// kernel: tpu_custom_call.1
= control target key start
LH: loop header
LB: loop body
LE: loop exit
PB: predicated region body
PF: predicated region fallthrough
CT: control target
= control target key end

     0   :  { %8 = vsyncpa [#allocation3], 0  ;;  %s224_s0 = inlined_call_operand.hbm [shape: f32[1,128], index: 0, kind: input, shape index: {}]   ;;  %s225_s1 = inlined_call_operand.hbm [shape: f32[128,128], index: 1, kind: input, shape index: {}]   ;;  %s226_s2 = inlined_call_operand.vmem [shape: f32[1,128], index: 2, kind: input, shape index: {}]   ;;  %s227_s3 = inlined_call_operand.hbm [shape: f32[1,128], index: 3, kind: output, shape index: {}]  }
   0x1   :  { %9 = vsyncpa [#allocation6], 0 }
   0x2   :  { %10 = vsyncpa [#allocation4], 0  ;;  %s16_s14 = sshll.u32 %s224_s0, 4  ;;  %s187_s15 = smov [#allocation2]   ;;  %s17_s14 = int_to_ptr.hbm [resolvable:$true] %s16_s14 }
   0x3   :  { %s18_s16 = sshll.u32 %s187_s15, 4  ;;  %s26_s19 = sshll.u32 %s225_s1, 4  ;;  %s19_s16 = int_to_ptr.vmem [resolvable:$true] %s18_s16  ;;  %s27_s19 = int_to_ptr.hbm [resolvable:$true] %s26_s19 }
   0x4   :  { %21 = dma.hbm_to_vmem [thread:$0]  %s17_s14, 16, %s19_s16, [#allocation3]  }
   0x5   :  { %s188_s20 = smov [#allocation5]   ;;  %s189_s22 = smov 128  }
   0x6   :  { %s28_s21 = sshll.u32 %s188_s20, 4  ;;  %s190_s23 = smov 8   ;;  %s29_s21 = int_to_ptr.vmem [resolvable:$true] %s28_s21 }
   0x7   :  { %34 = dma.hbm_to_vmem [thread:$0]  %s27_s19, 2048, %s29_s21, [#allocation6], %s189_s22, %s189_s22, %s190_s23  }
   0x8   :  { %181 = dma.done.wait [#allocation3], 16  }
   0x9   :  { %182 = vsyncadd [#allocation3], 4294967280 }
   0xa   :  { %183 = dma.done.wait [#allocation6], 2048  }
   0xb   :  { %184 = vsyncadd [#allocation6], 4294965248  ;;  %v61_v0 = vld [vmem:[#allocation5 + $0x78] sm:$0xff]  ;;  %v60_v1 = vld [vmem:[#allocation5 + $0x70] sm:$0xff]  ;;  %s191_s24 = smov [#allocation7]   ;;  %s93_s28 = sshll.u32 %s227_s3, 4  ;;  %s94_s28 = int_to_ptr.hbm [resolvable:$true] %s93_s28 }
   0xc   :  { %63 = vmatpush.msra.mxu0 %v61_v0  ;;  %v59_v2 = vld [vmem:[#allocation5 + $0x68] sm:$0xff]  ;;  %v58_v3 = vld [vmem:[#allocation5 + $0x60] sm:$0xff]  ;;  %v57_v4 = vld [vmem:[#allocation5 + $0x58] sm:$0xff]  ;;  %s91_s25 = sshll.u32 %s191_s24, 4  ;;  %s92_s25 = int_to_ptr.vmem [resolvable:$true] %s91_s25 }
   0xd   :  { %v56_v5 = vld [vmem:[#allocation5 + $0x50] sm:$0xff]  ;;  %v55_v6 = vld [vmem:[#allocation5 + $0x48] sm:$0xff]  ;;  %v54_v7 = vld [vmem:[#allocation5 + $0x40] sm:$0xff] }
   0xe   :  { %64 = vmatpush.msra.mxu0 %v60_v1  ;;  %v53_v8 = vld [vmem:[#allocation5 + $0x38] sm:$0xff]  ;;  %v52_v9 = vld [vmem:[#allocation5 + $0x30] sm:$0xff]  ;;  %v51_v10 = vld [vmem:[#allocation5 + $0x28] sm:$0xff] }
   0xf   :  { %v50_v11 = vld [vmem:[#allocation5 + $0x20] sm:$0xff]  ;;  %v49_v12 = vld [vmem:[#allocation5 + $0x18] sm:$0xff]  ;;  %v48_v13 = vld [vmem:[#allocation5 + $0x10] sm:$0xff] }
  0x10   :  { %65 = vmatpush.msra.mxu0 %v59_v2  ;;  %v47_v14 = vld [vmem:[#allocation5 + $0x8] sm:$0xff]  ;;  %v46_v15 = vld [vmem:[#allocation5] sm:$0xff]  ;;  %v45_v16 = vld [vmem:[#allocation2] sm:$0x1] }
  0x11   :  { %v62_v17 = vld [vmem:[%s226_s2] sm:$0x1] }
  0x12   :  { %66 = vmatpush.msra.mxu0 %v58_v3 }
  0x14   :  { %67 = vmatpush.msra.mxu0 %v57_v4 }
  0x16   :  { %68 = vmatpush.msra.mxu0 %v56_v5 }
  0x18   :  { %69 = vmatpush.msra.mxu0 %v55_v6 }
  0x1a   :  { %70 = vmatpush.msra.mxu0 %v54_v7 }
  0x1c   :  { %71 = vmatpush.msra.mxu0 %v53_v8 }
  0x1e   :  { %72 = vmatpush.msra.mxu0 %v52_v9 }
  0x20   :  { %73 = vmatpush.msra.mxu0 %v51_v10 }
  0x22   :  { %74 = vmatpush.msra.mxu0 %v50_v11 }
  0x24   :  { %75 = vmatpush.msra.mxu0 %v49_v12 }
  0x26   :  { %76 = vmatpush.msra.mxu0 %v48_v13 }
  0x28   :  { %77 = vmatpush.msra.mxu0 %v47_v14 }
  0x2a   :  { %78 = vmatpush.msra.mxu0 %v46_v15 }
  0x2b   :  { %79 = vmatmul.f32.vlgmr.msra.gmra.mxu0 %v45_v16 }
  0xa8   :  { %v80_v18 = vpop.f32.mrf.mxu0 }
  0xa9   :  { %v81_v19 = vadd.f32 %v80_v18, %v62_v17 }
  0xab   :  { %v83_v20 = vmax.f32 %v81_v19, 0.0 }
  0xad   :  { %v84_v21 = vmin.f32 %v83_v20, 1.0 }
  0xaf   :  { %85 = vst [vmem:[#allocation7] sm:$0x1] %v84_v21 }
  0xb0   :  { %96 = dma.vmem_to_hbm [thread:$0]  %s92_s25, 16, %s94_s28, [#allocation4]  }
  0xb1   :  { %185 = dma.done.wait [#allocation4], 16  }
  0xb2   :  { %186 = vsyncadd [#allocation4], 4294967280 }
  0xb3   :  { %101 = vsyncpa [#allocation3], 1 }
  0xb4   :  { %102 = vsyncpa [#allocation6], 1 }
  0xb5   :  { %103 = vsyncpa [#allocation4], 1 }

</bundles_post_ra>
